<compile_context>
chip_gen: v7x
topology: tpu7x:2x2x1
jax: 0.10.0
libtpu: 0.0.40
codegen_flags: <defaults>
</compile_context>

<pallas_src>
import jax
import jax.numpy as jnp
from jax.experimental import pallas as pl
from jax.experimental.pallas import tpu as pltpu


class LstmEncoder:
    """Faithful port of the (empty) PyTorch LstmEncoder."""

    def __init__(self):
        # Reference __init__ is `pass`: no parameters to initialize.
        pass

    def forward(self):
        # Reference forward is `pass`: returns None, no computation.
        return None


# ----------------------------------------------------------------------------
# Path 1: direct HBM -> HBM DMA copy (no VMEM round-trip, no per-step grid).
# ----------------------------------------------------------------------------
def _hbm_copy_kernel(x_hbm, o_hbm, sem):
    cp = pltpu.make_async_copy(x_hbm, o_hbm, sem)
    cp.start()
    cp.wait()


def pallas_copy_hbm(x):
    """Copy `x` with a single HBM->HBM DMA (cheapest expression of a copy)."""
    if x.size == 0:
        return x
    return pl.pallas_call(
        _hbm_copy_kernel,
        out_shape=jax.ShapeDtypeStruct(x.shape, x.dtype),
        in_specs=[pl.BlockSpec(memory_space=pl.ANY)],
        out_specs=pl.BlockSpec(memory_space=pl.ANY),
        scratch_shapes=[pltpu.SemaphoreType.DMA(())],
    )(x)


# ----------------------------------------------------------------------------
# Path 2: tiled, auto-pipelined VMEM copy (BlockSpec demonstration).
# ----------------------------------------------------------------------------
def _copy_kernel(x_ref, o_ref):
    o_ref[...] = x_ref[...]


def _vmem_limit_bytes():
    """Scoped-VMEM limit derived from physical VMEM of the running chip."""
    try:
        cap = int(pltpu.get_tpu_info().vmem_capacity_bytes)
    except Exception:
        cap = 64 * 1024 * 1024  # conservative (v7x per-TC)
    # Half of physical, but never below 16 MiB or above 64 MiB.
    return min(max(cap // 2, 16 * 1024 * 1024), 64 * 1024 * 1024)


def _lane_dense_2d(shape, size):
    """Pick a (rows, cols) presentation; lane-dense (cols % 128 == 0) when possible."""
    last = shape[-1] if len(shape) >= 1 else 1
    if last >= 128 and last % 128 == 0:
        return size // last, last
    # Lane-sparse last dim: fold rows into a wide multiple-of-128 lane axis.
    if size % 128 == 0:
        for cand in (8192, 4096, 2048, 1024, 512, 256, 128):
            if size % cand == 0:
                return size // cand, cand
    # Fallback: keep the original last dim as the (full-extent) lane axis.
    if len(shape) >= 2:
        return size // last, last
    return 1, size


def pallas_copy_tiled(x, *, max_tile_bytes=4 * 1024 * 1024):
    """Device copy of `x` through a tiled, auto-pipelined Pallas kernel."""
    if x.size == 0:
        return x

    rows, cols = _lane_dense_2d(x.shape, x.size)
    x2 = x.reshape(rows, cols)
    itemsize = jnp.dtype(x.dtype).itemsize
    # dtype-aware sublane multiple: 8 for 4-byte, 16 for 2-byte, 32 for 1-byte.
    sub = max(8, 32 // max(itemsize, 1))

    # Lane tiling fallback for very wide rows; tile_cols stays a multiple of 128
    # (or equals the full extent).
    if cols % 128 == 0 and cols > 128:
        cols_budget = max(128, (max_tile_bytes // (sub * itemsize)) // 128 * 128)
        tile_cols = min(cols, cols_budget)
    else:
        tile_cols = cols  # full extent satisfies the (8,128) rule

    row_bytes = max(tile_cols * itemsize, 1)
    tile_rows = max_tile_bytes // row_bytes
    if tile_rows >= rows:
        tile_rows = rows  # single full-extent row block
    else:
        tile_rows = max(sub, (tile_rows // sub) * sub)

    # Megacore (v7x): if the whole array collapses to one block but is large,
    # split rows so the "parallel" grid axis can shard across both TCs.
    total_bytes = rows * cols * itemsize
    if (tile_rows == rows and tile_cols == cols
            and total_bytes > (1 << 20) and rows >= 2 * sub):
        half = (((rows + 1) // 2 + sub - 1) // sub) * sub
        if half < rows:
            tile_rows = half

    grid = (pl.cdiv(rows, tile_rows), pl.cdiv(cols, tile_cols))

    out2 = pl.pallas_call(
        _copy_kernel,
        out_shape=jax.ShapeDtypeStruct((rows, cols), x.dtype),
        grid=grid,
        in_specs=[pl.BlockSpec((tile_rows, tile_cols), lambda i, j: (i, j))],
        out_specs=pl.BlockSpec((tile_rows, tile_cols), lambda i, j: (i, j)),
        compiler_params=pltpu.CompilerParams(
            dimension_semantics=("parallel", "parallel"),
            vmem_limit_bytes=_vmem_limit_bytes(),
        ),
    )(x2)
    return out2.reshape(x.shape)


if __name__ == "__main__":
    # Module under test: empty forward, returns None.
    enc = LstmEncoder()
    result = enc.forward()
    assert result is None, "LstmEncoder.forward() must return None (reference is a stub)"

    key = jax.random.PRNGKey(0)
    k1, k2, k3 = jax.random.split(key, 3)

    # batch=2, seq=8, hidden=32: lane-sparse last dim -> folded to lane-dense view.
    x_small = jax.random.normal(k1, (2, 8, 32), dtype=jnp.float32)
    # bf16 + rows not a multiple of the packed sublane tile -> dtype-aware path.
    x_bf16 = jax.random.normal(k2, (22, 384), dtype=jnp.bfloat16)
    # Forces a multi-step grid with a masked trailing row block.
    x_mid = jax.random.normal(k3, (300, 640), dtype=jnp.float32)

    cases = [
        ("hbm_small", x_small, pallas_copy_hbm, {}),
        ("hbm_bf16", x_bf16, pallas_copy_hbm, {}),
        ("hbm_mid", x_mid, pallas_copy_hbm, {}),
        ("tiled_small", x_small, pallas_copy_tiled, {}),
        ("tiled_bf16", x_bf16, pallas_copy_tiled, {}),
        ("tiled_mid", x_mid, pallas_copy_tiled, {"max_tile_bytes": 64 * 1024}),
    ]
    for name, arr, fn, kwargs in cases:
        y = fn(arr, **kwargs)
        jax.block_until_ready(y)
        assert bool(jnp.array_equal(y, arr)), f"copy kernel mismatch: {name}"

    print("KERNEL_OK")
</pallas_src>

<mosaic_0001>
module attributes {stable_mosaic.version = 11 : i64} {
  func.func @_hbm_copy_kernel(%arg0: memref<2x8x32xf32, #tpu.memory_space<any>>, %arg1: memref<2x8x32xf32, #tpu.memory_space<any>>, %arg2: memref<!tpu.dma_semaphore, #tpu.memory_space<semaphore_mem>>) attributes {dimension_semantics = [], scalar_prefetch = 0 : i64, scratch_operands = 1 : i64, tpu.core_type = #tpu.core_type<tc>} {
    tpu.enqueue_dma source(%arg0 : memref<2x8x32xf32, #tpu.memory_space<any>>) target(%arg1 : memref<2x8x32xf32, #tpu.memory_space<any>>) target_semaphore(%arg2 : memref<!tpu.dma_semaphore, #tpu.memory_space<semaphore_mem>>)
    tpu.wait_dma2 semaphore(%arg2 : memref<!tpu.dma_semaphore, #tpu.memory_space<semaphore_mem>>) src(%arg0 : memref<2x8x32xf32, #tpu.memory_space<any>>) dst(%arg1 : memref<2x8x32xf32, #tpu.memory_space<any>>)
    return
  }
}

</mosaic_0001>

<bundles_post_ra>
// kernel: tpu_custom_call.1
= control target key start
LH: loop header
LB: loop body
LE: loop exit
PB: predicated region body
PF: predicated region fallthrough
CT: control target
= control target key end

     0   :  { %s35_s6 = smov [#allocation2]   ;;  %s36_s7 = smov [#allocation3]   ;;  %s54_s0 = inlined_call_operand.hbm [shape: f32[2,8,32], index: 0, kind: input, shape index: {}]   ;;  %s55_s1 = inlined_call_operand.hbm [shape: f32[2,8,32], index: 1, kind: output, shape index: {}]  }
   0x1   :  { %s37_s8 = smov 0  }
   0x2   :  { %18 = dma.general %s54_s0, 256, %s55_s1, %s35_s6, %s36_s7, [#allocation4], %s37_s8, 0  }
   0x3   :  { %33 = dma.done.wait [#allocation2], 256 }
   0x4   :  { %34 = vsyncadd [#allocation2], 4294967040 }
   0x5   :  { %23 = vsyncmov [#allocation2] }
   0x8   :  { %s24_s13 = vpop.sfrf %23 }
   0x9   :  { %p29_p0 = scmp.ne.s32.totalorder %s24_s13, 0 }
   0xb   :  { %28 = shalt.err (%p29_p0)  }

</bundles_post_ra>
